<compile_context>
chip_gen: v6e
topology: v6e:2x2x1
jax: 0.10.0
libtpu: 0.0.40
codegen_flags: <defaults>
</compile_context>

<pallas_src>
import jax
import jax.numpy as jnp
from jax.experimental import pallas as pl
from jax.experimental.pallas import tpu as pltpu


def _gather_rows_kernel(ids_ref, table_hbm, out_ref, row_buf, copy_sems):
    """One grid step gathers `tokens_per_tile` embedding rows from HBM.

    ids_ref:   (N_pad,) int32 in SMEM (scalar prefetch)
    table_hbm: (V, D)   embedding table, left in HBM (pl.ANY)
    out_ref:   (TN, D)  output block in VMEM
    row_buf:   (TN, D)  VMEM scratch the DMAs land in
    copy_sems: (TN,)    DMA completion semaphores
    """
    t = pl.program_id(0)
    tn = out_ref.shape[0]
    base = t * tn

    # Issue all per-row DMAs first so they overlap, then wait on each.
    for i in range(tn):
        row = ids_ref[base + i]
        pltpu.make_async_copy(
            table_hbm.at[pl.ds(row, 1), :],
            row_buf.at[pl.ds(i, 1), :],
            copy_sems.at[i],
        ).start()

    for i in range(tn):
        # Source slice here only fixes the copy shape for the wait.
        pltpu.make_async_copy(
            table_hbm.at[pl.ds(0, 1), :],
            row_buf.at[pl.ds(i, 1), :],
            copy_sems.at[i],
        ).wait()

    out_ref[...] = row_buf[...]


def word_embedding_lookup(ids, emb_table, *, tokens_per_tile=8):
    """Equivalent of `self.word_emb(ids)`: (B, S) int -> (B, S, D) float32.

    For large batches, raise `tokens_per_tile` (e.g. 256-512) so each grid
    step amortizes the ~0.35 us/step overhead over more DMA'd rows.
    """
    B, S = ids.shape
    V, D = emb_table.shape
    N = B * S

    tn = int(tokens_per_tile)
    n_pad = ((N + tn - 1) // tn) * tn

    # torch.nn.Embedding errors on out-of-range ids; we clamp instead so the
    # HBM row DMA can never fault.  (Documented behavioral divergence.)
    ids_flat = jnp.clip(ids.reshape(N).astype(jnp.int32), 0, V - 1)
    if n_pad != N:
        ids_flat = jnp.concatenate(
            [ids_flat, jnp.zeros((n_pad - N,), jnp.int32)]
        )

    grid = (n_pad // tn,)

    out = pl.pallas_call(
        _gather_rows_kernel,
        out_shape=jax.ShapeDtypeStruct((n_pad, D), emb_table.dtype),
        grid_spec=pltpu.PrefetchScalarGridSpec(
            num_scalar_prefetch=1,            # ids land in SMEM
            grid=grid,
            in_specs=[
                pl.BlockSpec(memory_space=pl.ANY),   # table stays in HBM
            ],
            out_specs=pl.BlockSpec((tn, D), lambda t, ids: (t, 0)),
            scratch_shapes=[
                pltpu.VMEM((tn, D), emb_table.dtype),   # DMA landing buffer
                pltpu.SemaphoreType.DMA((tn,)),          # one sem per row DMA
            ],
        ),
        compiler_params=pltpu.CompilerParams(
            dimension_semantics=("parallel",),   # shard tokens across TCs (v7x)
        ),
    )(ids_flat, emb_table)

    return out[:N].reshape(B, S, D)


if __name__ == "__main__":
    key = jax.random.PRNGKey(0)
    k_emb, k_ids = jax.random.split(key)

    # Synthetic "meta.word_vector": deterministic pretrained-style table.
    num_vocab = 64
    w2v_emb_size = 32
    word_vector = jax.random.normal(
        k_emb, (num_vocab, w2v_emb_size), jnp.float32
    )

    # Example token ids (batch=2, seq=8), consistent with an embedding lookup.
    batch, seq = 2, 8
    ids = jax.random.randint(k_ids, (batch, seq), 0, num_vocab, dtype=jnp.int32)

    out = word_embedding_lookup(ids, word_vector, tokens_per_tile=8)
    out = jax.block_until_ready(out)

    # Sanity check against plain-JAX gather semantics of nn.Embedding.
    ref = word_vector[ids]
    assert out.shape == (batch, seq, w2v_emb_size)
    assert jnp.allclose(out, ref, atol=1e-6), "mismatch vs reference gather"

    print("KERNEL_OK")
</pallas_src>

<mosaic_0001>
module attributes {stable_mosaic.version = 11 : i64} {
  func.func @_gather_rows_kernel(%arg0: i32, %arg1: memref<16xi32, #tpu.memory_space<smem>>, %arg2: memref<64x32xf32, #tpu.memory_space<any>>, %arg3: memref<8x32xf32, #tpu.memory_space<vmem>>, %arg4: memref<8x32xf32, #tpu.memory_space<vmem>>, %arg5: memref<8x!tpu.dma_semaphore, #tpu.memory_space<semaphore_mem>>) attributes {dimension_semantics = [#tpu.dimension_semantics<parallel>], iteration_bounds = array<i64: 2>, scalar_prefetch = 1 : i64, scratch_operands = 2 : i64, tpu.core_type = #tpu.core_type<tc>, window_params = [{}, {transform_indices = @transform_1, window_bounds = array<i64: 8, 32>}]} {
    %c8_i32 = arith.constant 8 : i32
    %0 = arith.muli %arg0, %c8_i32 : i32
    %c0_i32 = arith.constant 0 : i32
    %1 = arith.addi %0, %c0_i32 : i32
    %2 = arith.index_cast %1 : i32 to index
    %3 = memref.load %arg1[%2] : memref<16xi32, #tpu.memory_space<smem>>
    %c0_i32_0 = arith.constant 0 : i32
    %c0_i32_1 = arith.constant 0 : i32
    %4 = tpu.memref_slice %arg2[%3, %c0_i32_1] : memref<64x32xf32, #tpu.memory_space<any>> -> memref<1x32xf32, #tpu.memory_space<any>>
    %c0_i32_2 = arith.constant 0 : i32
    %c0_i32_3 = arith.constant 0 : i32
    %5 = tpu.memref_slice %arg4[%c0_i32_2, %c0_i32_3] : memref<8x32xf32, #tpu.memory_space<vmem>> -> memref<1x32xf32, #tpu.memory_space<vmem>>
    %6 = tpu.memref_slice %arg5[%c0_i32_0] : memref<8x!tpu.dma_semaphore, #tpu.memory_space<semaphore_mem>> -> memref<1x!tpu.dma_semaphore, #tpu.memory_space<semaphore_mem>>
    %7 = tpu.memref_squeeze %6 : memref<1x!tpu.dma_semaphore, #tpu.memory_space<semaphore_mem>> -> memref<!tpu.dma_semaphore, #tpu.memory_space<semaphore_mem>>
    tpu.enqueue_dma source(%4 : memref<1x32xf32, #tpu.memory_space<any>>) target(%5 : memref<1x32xf32, #tpu.memory_space<vmem>>) target_semaphore(%7 : memref<!tpu.dma_semaphore, #tpu.memory_space<semaphore_mem>>)
    %c1_i32 = arith.constant 1 : i32
    %8 = arith.addi %0, %c1_i32 : i32
    %9 = arith.index_cast %8 : i32 to index
    %10 = memref.load %arg1[%9] : memref<16xi32, #tpu.memory_space<smem>>
    %c1_i32_4 = arith.constant 1 : i32
    %c0_i32_5 = arith.constant 0 : i32
    %11 = tpu.memref_slice %arg2[%10, %c0_i32_5] : memref<64x32xf32, #tpu.memory_space<any>> -> memref<1x32xf32, #tpu.memory_space<any>>
    %c1_i32_6 = arith.constant 1 : i32
    %c0_i32_7 = arith.constant 0 : i32
    %12 = tpu.memref_slice %arg4[%c1_i32_6, %c0_i32_7] : memref<8x32xf32, #tpu.memory_space<vmem>> -> memref<1x32xf32, #tpu.memory_space<vmem>>
    %13 = tpu.memref_slice %arg5[%c1_i32_4] : memref<8x!tpu.dma_semaphore, #tpu.memory_space<semaphore_mem>> -> memref<1x!tpu.dma_semaphore, #tpu.memory_space<semaphore_mem>>
    %14 = tpu.memref_squeeze %13 : memref<1x!tpu.dma_semaphore, #tpu.memory_space<semaphore_mem>> -> memref<!tpu.dma_semaphore, #tpu.memory_space<semaphore_mem>>
    tpu.enqueue_dma source(%11 : memref<1x32xf32, #tpu.memory_space<any>>) target(%12 : memref<1x32xf32, #tpu.memory_space<vmem>>) target_semaphore(%14 : memref<!tpu.dma_semaphore, #tpu.memory_space<semaphore_mem>>)
    %c2_i32 = arith.constant 2 : i32
    %15 = arith.addi %0, %c2_i32 : i32
    %16 = arith.index_cast %15 : i32 to index
    %17 = memref.load %arg1[%16] : memref<16xi32, #tpu.memory_space<smem>>
    %c2_i32_8 = arith.constant 2 : i32
    %c0_i32_9 = arith.constant 0 : i32
    %18 = tpu.memref_slice %arg2[%17, %c0_i32_9] : memref<64x32xf32, #tpu.memory_space<any>> -> memref<1x32xf32, #tpu.memory_space<any>>
    %c2_i32_10 = arith.constant 2 : i32
    %c0_i32_11 = arith.constant 0 : i32
    %19 = tpu.memref_slice %arg4[%c2_i32_10, %c0_i32_11] : memref<8x32xf32, #tpu.memory_space<vmem>> -> memref<1x32xf32, #tpu.memory_space<vmem>>
    %20 = tpu.memref_slice %arg5[%c2_i32_8] : memref<8x!tpu.dma_semaphore, #tpu.memory_space<semaphore_mem>> -> memref<1x!tpu.dma_semaphore, #tpu.memory_space<semaphore_mem>>
    %21 = tpu.memref_squeeze %20 : memref<1x!tpu.dma_semaphore, #tpu.memory_space<semaphore_mem>> -> memref<!tpu.dma_semaphore, #tpu.memory_space<semaphore_mem>>
    tpu.enqueue_dma source(%18 : memref<1x32xf32, #tpu.memory_space<any>>) target(%19 : memref<1x32xf32, #tpu.memory_space<vmem>>) target_semaphore(%21 : memref<!tpu.dma_semaphore, #tpu.memory_space<semaphore_mem>>)
    %c3_i32 = arith.constant 3 : i32
    %22 = arith.addi %0, %c3_i32 : i32
    %23 = arith.index_cast %22 : i32 to index
    %24 = memref.load %arg1[%23] : memref<16xi32, #tpu.memory_space<smem>>
    %c3_i32_12 = arith.constant 3 : i32
    %c0_i32_13 = arith.constant 0 : i32
    %25 = tpu.memref_slice %arg2[%24, %c0_i32_13] : memref<64x32xf32, #tpu.memory_space<any>> -> memref<1x32xf32, #tpu.memory_space<any>>
    %c3_i32_14 = arith.constant 3 : i32
    %c0_i32_15 = arith.constant 0 : i32
    %26 = tpu.memref_slice %arg4[%c3_i32_14, %c0_i32_15] : memref<8x32xf32, #tpu.memory_space<vmem>> -> memref<1x32xf32, #tpu.memory_space<vmem>>
    %27 = tpu.memref_slice %arg5[%c3_i32_12] : memref<8x!tpu.dma_semaphore, #tpu.memory_space<semaphore_mem>> -> memref<1x!tpu.dma_semaphore, #tpu.memory_space<semaphore_mem>>
    %28 = tpu.memref_squeeze %27 : memref<1x!tpu.dma_semaphore, #tpu.memory_space<semaphore_mem>> -> memref<!tpu.dma_semaphore, #tpu.memory_space<semaphore_mem>>
    tpu.enqueue_dma source(%25 : memref<1x32xf32, #tpu.memory_space<any>>) target(%26 : memref<1x32xf32, #tpu.memory_space<vmem>>) target_semaphore(%28 : memref<!tpu.dma_semaphore, #tpu.memory_space<semaphore_mem>>)
    %c4_i32 = arith.constant 4 : i32
    %29 = arith.addi %0, %c4_i32 : i32
    %30 = arith.index_cast %29 : i32 to index
    %31 = memref.load %arg1[%30] : memref<16xi32, #tpu.memory_space<smem>>
    %c4_i32_16 = arith.constant 4 : i32
    %c0_i32_17 = arith.constant 0 : i32
    %32 = tpu.memref_slice %arg2[%31, %c0_i32_17] : memref<64x32xf32, #tpu.memory_space<any>> -> memref<1x32xf32, #tpu.memory_space<any>>
    %c4_i32_18 = arith.constant 4 : i32
    %c0_i32_19 = arith.constant 0 : i32
    %33 = tpu.memref_slice %arg4[%c4_i32_18, %c0_i32_19] : memref<8x32xf32, #tpu.memory_space<vmem>> -> memref<1x32xf32, #tpu.memory_space<vmem>>
    %34 = tpu.memref_slice %arg5[%c4_i32_16] : memref<8x!tpu.dma_semaphore, #tpu.memory_space<semaphore_mem>> -> memref<1x!tpu.dma_semaphore, #tpu.memory_space<semaphore_mem>>
    %35 = tpu.memref_squeeze %34 : memref<1x!tpu.dma_semaphore, #tpu.memory_space<semaphore_mem>> -> memref<!tpu.dma_semaphore, #tpu.memory_space<semaphore_mem>>
    tpu.enqueue_dma source(%32 : memref<1x32xf32, #tpu.memory_space<any>>) target(%33 : memref<1x32xf32, #tpu.memory_space<vmem>>) target_semaphore(%35 : memref<!tpu.dma_semaphore, #tpu.memory_space<semaphore_mem>>)
    %c5_i32 = arith.constant 5 : i32
    %36 = arith.addi %0, %c5_i32 : i32
    %37 = arith.index_cast %36 : i32 to index
    %38 = memref.load %arg1[%37] : memref<16xi32, #tpu.memory_space<smem>>
    %c5_i32_20 = arith.constant 5 : i32
    %c0_i32_21 = arith.constant 0 : i32
    %39 = tpu.memref_slice %arg2[%38, %c0_i32_21] : memref<64x32xf32, #tpu.memory_space<any>> -> memref<1x32xf32, #tpu.memory_space<any>>
    %c5_i32_22 = arith.constant 5 : i32
    %c0_i32_23 = arith.constant 0 : i32
    %40 = tpu.memref_slice %arg4[%c5_i32_22, %c0_i32_23] : memref<8x32xf32, #tpu.memory_space<vmem>> -> memref<1x32xf32, #tpu.memory_space<vmem>>
    %41 = tpu.memref_slice %arg5[%c5_i32_20] : memref<8x!tpu.dma_semaphore, #tpu.memory_space<semaphore_mem>> -> memref<1x!tpu.dma_semaphore, #tpu.memory_space<semaphore_mem>>
    %42 = tpu.memref_squeeze %41 : memref<1x!tpu.dma_semaphore, #tpu.memory_space<semaphore_mem>> -> memref<!tpu.dma_semaphore, #tpu.memory_space<semaphore_mem>>
    tpu.enqueue_dma source(%39 : memref<1x32xf32, #tpu.memory_space<any>>) target(%40 : memref<1x32xf32, #tpu.memory_space<vmem>>) target_semaphore(%42 : memref<!tpu.dma_semaphore, #tpu.memory_space<semaphore_mem>>)
    %c6_i32 = arith.constant 6 : i32
    %43 = arith.addi %0, %c6_i32 : i32
    %44 = arith.index_cast %43 : i32 to index
    %45 = memref.load %arg1[%44] : memref<16xi32, #tpu.memory_space<smem>>
    %c6_i32_24 = arith.constant 6 : i32
    %c0_i32_25 = arith.constant 0 : i32
    %46 = tpu.memref_slice %arg2[%45, %c0_i32_25] : memref<64x32xf32, #tpu.memory_space<any>> -> memref<1x32xf32, #tpu.memory_space<any>>
    %c6_i32_26 = arith.constant 6 : i32
    %c0_i32_27 = arith.constant 0 : i32
    %47 = tpu.memref_slice %arg4[%c6_i32_26, %c0_i32_27] : memref<8x32xf32, #tpu.memory_space<vmem>> -> memref<1x32xf32, #tpu.memory_space<vmem>>
    %48 = tpu.memref_slice %arg5[%c6_i32_24] : memref<8x!tpu.dma_semaphore, #tpu.memory_space<semaphore_mem>> -> memref<1x!tpu.dma_semaphore, #tpu.memory_space<semaphore_mem>>
    %49 = tpu.memref_squeeze %48 : memref<1x!tpu.dma_semaphore, #tpu.memory_space<semaphore_mem>> -> memref<!tpu.dma_semaphore, #tpu.memory_space<semaphore_mem>>
    tpu.enqueue_dma source(%46 : memref<1x32xf32, #tpu.memory_space<any>>) target(%47 : memref<1x32xf32, #tpu.memory_space<vmem>>) target_semaphore(%49 : memref<!tpu.dma_semaphore, #tpu.memory_space<semaphore_mem>>)
    %c7_i32 = arith.constant 7 : i32
    %50 = arith.addi %0, %c7_i32 : i32
    %51 = arith.index_cast %50 : i32 to index
    %52 = memref.load %arg1[%51] : memref<16xi32, #tpu.memory_space<smem>>
    %c7_i32_28 = arith.constant 7 : i32
    %c0_i32_29 = arith.constant 0 : i32
    %53 = tpu.memref_slice %arg2[%52, %c0_i32_29] : memref<64x32xf32, #tpu.memory_space<any>> -> memref<1x32xf32, #tpu.memory_space<any>>
    %c7_i32_30 = arith.constant 7 : i32
    %c0_i32_31 = arith.constant 0 : i32
    %54 = tpu.memref_slice %arg4[%c7_i32_30, %c0_i32_31] : memref<8x32xf32, #tpu.memory_space<vmem>> -> memref<1x32xf32, #tpu.memory_space<vmem>>
    %55 = tpu.memref_slice %arg5[%c7_i32_28] : memref<8x!tpu.dma_semaphore, #tpu.memory_space<semaphore_mem>> -> memref<1x!tpu.dma_semaphore, #tpu.memory_space<semaphore_mem>>
    %56 = tpu.memref_squeeze %55 : memref<1x!tpu.dma_semaphore, #tpu.memory_space<semaphore_mem>> -> memref<!tpu.dma_semaphore, #tpu.memory_space<semaphore_mem>>
    tpu.enqueue_dma source(%53 : memref<1x32xf32, #tpu.memory_space<any>>) target(%54 : memref<1x32xf32, #tpu.memory_space<vmem>>) target_semaphore(%56 : memref<!tpu.dma_semaphore, #tpu.memory_space<semaphore_mem>>)
    %c0_i32_32 = arith.constant 0 : i32
    %c0_i32_33 = arith.constant 0 : i32
    %c0_i32_34 = arith.constant 0 : i32
    %57 = tpu.memref_slice %arg2[%c0_i32_33, %c0_i32_34] : memref<64x32xf32, #tpu.memory_space<any>> -> memref<1x32xf32, #tpu.memory_space<any>>
    %c0_i32_35 = arith.constant 0 : i32
    %c0_i32_36 = arith.constant 0 : i32
    %58 = tpu.memref_slice %arg4[%c0_i32_35, %c0_i32_36] : memref<8x32xf32, #tpu.memory_space<vmem>> -> memref<1x32xf32, #tpu.memory_space<vmem>>
    %59 = tpu.memref_slice %arg5[%c0_i32_32] : memref<8x!tpu.dma_semaphore, #tpu.memory_space<semaphore_mem>> -> memref<1x!tpu.dma_semaphore, #tpu.memory_space<semaphore_mem>>
    %60 = tpu.memref_squeeze %59 : memref<1x!tpu.dma_semaphore, #tpu.memory_space<semaphore_mem>> -> memref<!tpu.dma_semaphore, #tpu.memory_space<semaphore_mem>>
    tpu.wait_dma2 semaphore(%60 : memref<!tpu.dma_semaphore, #tpu.memory_space<semaphore_mem>>) src(%57 : memref<1x32xf32, #tpu.memory_space<any>>) dst(%58 : memref<1x32xf32, #tpu.memory_space<vmem>>)
    %c1_i32_37 = arith.constant 1 : i32
    %c0_i32_38 = arith.constant 0 : i32
    %c0_i32_39 = arith.constant 0 : i32
    %61 = tpu.memref_slice %arg2[%c0_i32_38, %c0_i32_39] : memref<64x32xf32, #tpu.memory_space<any>> -> memref<1x32xf32, #tpu.memory_space<any>>
    %c1_i32_40 = arith.constant 1 : i32
    %c0_i32_41 = arith.constant 0 : i32
    %62 = tpu.memref_slice %arg4[%c1_i32_40, %c0_i32_41] : memref<8x32xf32, #tpu.memory_space<vmem>> -> memref<1x32xf32, #tpu.memory_space<vmem>>
    %63 = tpu.memref_slice %arg5[%c1_i32_37] : memref<8x!tpu.dma_semaphore, #tpu.memory_space<semaphore_mem>> -> memref<1x!tpu.dma_semaphore, #tpu.memory_space<semaphore_mem>>
    %64 = tpu.memref_squeeze %63 : memref<1x!tpu.dma_semaphore, #tpu.memory_space<semaphore_mem>> -> memref<!tpu.dma_semaphore, #tpu.memory_space<semaphore_mem>>
    tpu.wait_dma2 semaphore(%64 : memref<!tpu.dma_semaphore, #tpu.memory_space<semaphore_mem>>) src(%61 : memref<1x32xf32, #tpu.memory_space<any>>) dst(%62 : memref<1x32xf32, #tpu.memory_space<vmem>>)
    %c2_i32_42 = arith.constant 2 : i32
    %c0_i32_43 = arith.constant 0 : i32
    %c0_i32_44 = arith.constant 0 : i32
    %65 = tpu.memref_slice %arg2[%c0_i32_43, %c0_i32_44] : memref<64x32xf32, #tpu.memory_space<any>> -> memref<1x32xf32, #tpu.memory_space<any>>
    %c2_i32_45 = arith.constant 2 : i32
    %c0_i32_46 = arith.constant 0 : i32
    %66 = tpu.memref_slice %arg4[%c2_i32_45, %c0_i32_46] : memref<8x32xf32, #tpu.memory_space<vmem>> -> memref<1x32xf32, #tpu.memory_space<vmem>>
    %67 = tpu.memref_slice %arg5[%c2_i32_42] : memref<8x!tpu.dma_semaphore, #tpu.memory_space<semaphore_mem>> -> memref<1x!tpu.dma_semaphore, #tpu.memory_space<semaphore_mem>>
    %68 = tpu.memref_squeeze %67 : memref<1x!tpu.dma_semaphore, #tpu.memory_space<semaphore_mem>> -> memref<!tpu.dma_semaphore, #tpu.memory_space<semaphore_mem>>
    tpu.wait_dma2 semaphore(%68 : memref<!tpu.dma_semaphore, #tpu.memory_space<semaphore_mem>>) src(%65 : memref<1x32xf32, #tpu.memory_space<any>>) dst(%66 : memref<1x32xf32, #tpu.memory_space<vmem>>)
    %c3_i32_47 = arith.constant 3 : i32
    %c0_i32_48 = arith.constant 0 : i32
    %c0_i32_49 = arith.constant 0 : i32
    %69 = tpu.memref_slice %arg2[%c0_i32_48, %c0_i32_49] : memref<64x32xf32, #tpu.memory_space<any>> -> memref<1x32xf32, #tpu.memory_space<any>>
    %c3_i32_50 = arith.constant 3 : i32
    %c0_i32_51 = arith.constant 0 : i32
    %70 = tpu.memref_slice %arg4[%c3_i32_50, %c0_i32_51] : memref<8x32xf32, #tpu.memory_space<vmem>> -> memref<1x32xf32, #tpu.memory_space<vmem>>
    %71 = tpu.memref_slice %arg5[%c3_i32_47] : memref<8x!tpu.dma_semaphore, #tpu.memory_space<semaphore_mem>> -> memref<1x!tpu.dma_semaphore, #tpu.memory_space<semaphore_mem>>
    %72 = tpu.memref_squeeze %71 : memref<1x!tpu.dma_semaphore, #tpu.memory_space<semaphore_mem>> -> memref<!tpu.dma_semaphore, #tpu.memory_space<semaphore_mem>>
    tpu.wait_dma2 semaphore(%72 : memref<!tpu.dma_semaphore, #tpu.memory_space<semaphore_mem>>) src(%69 : memref<1x32xf32, #tpu.memory_space<any>>) dst(%70 : memref<1x32xf32, #tpu.memory_space<vmem>>)
    %c4_i32_52 = arith.constant 4 : i32
    %c0_i32_53 = arith.constant 0 : i32
    %c0_i32_54 = arith.constant 0 : i32
    %73 = tpu.memref_slice %arg2[%c0_i32_53, %c0_i32_54] : memref<64x32xf32, #tpu.memory_space<any>> -> memref<1x32xf32, #tpu.memory_space<any>>
    %c4_i32_55 = arith.constant 4 : i32
    %c0_i32_56 = arith.constant 0 : i32
    %74 = tpu.memref_slice %arg4[%c4_i32_55, %c0_i32_56] : memref<8x32xf32, #tpu.memory_space<vmem>> -> memref<1x32xf32, #tpu.memory_space<vmem>>
    %75 = tpu.memref_slice %arg5[%c4_i32_52] : memref<8x!tpu.dma_semaphore, #tpu.memory_space<semaphore_mem>> -> memref<1x!tpu.dma_semaphore, #tpu.memory_space<semaphore_mem>>
    %76 = tpu.memref_squeeze %75 : memref<1x!tpu.dma_semaphore, #tpu.memory_space<semaphore_mem>> -> memref<!tpu.dma_semaphore, #tpu.memory_space<semaphore_mem>>
    tpu.wait_dma2 semaphore(%76 : memref<!tpu.dma_semaphore, #tpu.memory_space<semaphore_mem>>) src(%73 : memref<1x32xf32, #tpu.memory_space<any>>) dst(%74 : memref<1x32xf32, #tpu.memory_space<vmem>>)
    %c5_i32_57 = arith.constant 5 : i32
    %c0_i32_58 = arith.constant 0 : i32
    %c0_i32_59 = arith.constant 0 : i32
    %77 = tpu.memref_slice %arg2[%c0_i32_58, %c0_i32_59] : memref<64x32xf32, #tpu.memory_space<any>> -> memref<1x32xf32, #tpu.memory_space<any>>
    %c5_i32_60 = arith.constant 5 : i32
    %c0_i32_61 = arith.constant 0 : i32
    %78 = tpu.memref_slice %arg4[%c5_i32_60, %c0_i32_61] : memref<8x32xf32, #tpu.memory_space<vmem>> -> memref<1x32xf32, #tpu.memory_space<vmem>>
    %79 = tpu.memref_slice %arg5[%c5_i32_57] : memref<8x!tpu.dma_semaphore, #tpu.memory_space<semaphore_mem>> -> memref<1x!tpu.dma_semaphore, #tpu.memory_space<semaphore_mem>>
    %80 = tpu.memref_squeeze %79 : memref<1x!tpu.dma_semaphore, #tpu.memory_space<semaphore_mem>> -> memref<!tpu.dma_semaphore, #tpu.memory_space<semaphore_mem>>
    tpu.wait_dma2 semaphore(%80 : memref<!tpu.dma_semaphore, #tpu.memory_space<semaphore_mem>>) src(%77 : memref<1x32xf32, #tpu.memory_space<any>>) dst(%78 : memref<1x32xf32, #tpu.memory_space<vmem>>)
    %c6_i32_62 = arith.constant 6 : i32
    %c0_i32_63 = arith.constant 0 : i32
    %c0_i32_64 = arith.constant 0 : i32
    %81 = tpu.memref_slice %arg2[%c0_i32_63, %c0_i32_64] : memref<64x32xf32, #tpu.memory_space<any>> -> memref<1x32xf32, #tpu.memory_space<any>>
    %c6_i32_65 = arith.constant 6 : i32
    %c0_i32_66 = arith.constant 0 : i32
    %82 = tpu.memref_slice %arg4[%c6_i32_65, %c0_i32_66] : memref<8x32xf32, #tpu.memory_space<vmem>> -> memref<1x32xf32, #tpu.memory_space<vmem>>
    %83 = tpu.memref_slice %arg5[%c6_i32_62] : memref<8x!tpu.dma_semaphore, #tpu.memory_space<semaphore_mem>> -> memref<1x!tpu.dma_semaphore, #tpu.memory_space<semaphore_mem>>
    %84 = tpu.memref_squeeze %83 : memref<1x!tpu.dma_semaphore, #tpu.memory_space<semaphore_mem>> -> memref<!tpu.dma_semaphore, #tpu.memory_space<semaphore_mem>>
    tpu.wait_dma2 semaphore(%84 : memref<!tpu.dma_semaphore, #tpu.memory_space<semaphore_mem>>) src(%81 : memref<1x32xf32, #tpu.memory_space<any>>) dst(%82 : memref<1x32xf32, #tpu.memory_space<vmem>>)
    %c7_i32_67 = arith.constant 7 : i32
    %c0_i32_68 = arith.constant 0 : i32
    %c0_i32_69 = arith.constant 0 : i32
    %85 = tpu.memref_slice %arg2[%c0_i32_68, %c0_i32_69] : memref<64x32xf32, #tpu.memory_space<any>> -> memref<1x32xf32, #tpu.memory_space<any>>
    %c7_i32_70 = arith.constant 7 : i32
    %c0_i32_71 = arith.constant 0 : i32
    %86 = tpu.memref_slice %arg4[%c7_i32_70, %c0_i32_71] : memref<8x32xf32, #tpu.memory_space<vmem>> -> memref<1x32xf32, #tpu.memory_space<vmem>>
    %87 = tpu.memref_slice %arg5[%c7_i32_67] : memref<8x!tpu.dma_semaphore, #tpu.memory_space<semaphore_mem>> -> memref<1x!tpu.dma_semaphore, #tpu.memory_space<semaphore_mem>>
    %88 = tpu.memref_squeeze %87 : memref<1x!tpu.dma_semaphore, #tpu.memory_space<semaphore_mem>> -> memref<!tpu.dma_semaphore, #tpu.memory_space<semaphore_mem>>
    tpu.wait_dma2 semaphore(%88 : memref<!tpu.dma_semaphore, #tpu.memory_space<semaphore_mem>>) src(%85 : memref<1x32xf32, #tpu.memory_space<any>>) dst(%86 : memref<1x32xf32, #tpu.memory_space<vmem>>)
    %c0 = arith.constant 0 : index
    %c0_72 = arith.constant 0 : index
    %89 = vector.load %arg4[%c0, %c0_72] : memref<8x32xf32, #tpu.memory_space<vmem>>, vector<8x32xf32>
    %c0_73 = arith.constant 0 : index
    %c0_74 = arith.constant 0 : index
    %90 = vector.load %arg3[%c0_73, %c0_74] : memref<8x32xf32, #tpu.memory_space<vmem>>, vector<8x32xf32>
    tpu.vector_store %arg3[%c0_73, %c0_74], %89 {strides = array<i32>} : memref<8x32xf32, #tpu.memory_space<vmem>>, vector<8x32xf32>,
    return
  }
  func.func @transform_1(%arg0: i32, %arg1: memref<16xi32, #tpu.memory_space<smem>>) -> (i32, i32) {
    %c0_i32 = arith.constant 0 : i32
    %c0_i32_0 = arith.constant 0 : i32
    return %arg0, %c0_i32 : i32, i32
  }
}

</mosaic_0001>

<bundles_post_ra>
// kernel: tpu_custom_call.1
= control target key start
LH: loop header
LB: loop body
LE: loop exit
PB: predicated region body
PF: predicated region fallthrough
CT: control target
= control target key end

     0   :  { %s960_s0 = inlined_call_operand.vmem [shape: s32[16], index: 0, kind: input, shape index: {}]   ;;  %s961_s1 = inlined_call_operand.vmem [shape: f32[64,32], index: 1, kind: input, shape index: {}]   ;;  %s962_s2 = inlined_call_operand.hbm [shape: f32[16,32], index: 2, kind: output, shape index: {}]  }
   0x1   :  { %s7_s11 = sshll.u32 %s960_s0, 4  ;;  %s8_s11 = int_to_ptr.vmem [resolvable:$true] %s7_s11 }
   0x2   :  { %s736_s12 = scalar_lea.vmem %s8_s11, 16  ;;  %p741_p1 = scmp.lt.s32.totalorder %s8_s11, %s8_s11 }
   0x3   :  { %p737_p0 = scmp.ne.s32.totalorder %s8_s11, %s736_s12  ;;  %p742_p2 = scmp.lt.s32.totalorder %s736_s12, %s736_s12 }
   0x5   :  { %p743_p3 = por %p742_p2, %p741_p1 }
   0x7   :  { %p744_p4 = pnand %p743_p3, %p737_p0 }
   0x9   :  { %747 = shalt.err (!%p744_p4)  }
   0xa   :  { %s820_s13 = smov [#allocation5]  }
   0xb   :  { %10 = dma.vmem_to_smem %s8_s11, 16, %s820_s13, [#allocation4] }
   0xc   :  { %786 = dma.done.wait [#allocation4], 16 }
   0xd   :  { %787 = vsyncadd [#allocation4], 4294967280 }
   0xe   :  { %12 = sfence }
   0xf   :  { %13 = vsyncpa [#allocation7], 0 }
  0x10   :  { %15 = vsyncpa [#allocation7 + $0x1], 0  ;;  %s840_s14 = smov 0   ;;  %s842_s15 = smov 0  }
  0x11   :  { %s844_s0 = smov 0  }
  0x12 LB: > { %s687_s16 = sadd.s32 4294967295, %s818_s0   ;;  %s857_s17 = sadd.s32 1, %s818_s0   ;;  %s818_s0 = sphi %s844_s0, %s967_s0   ;;  %s814_s15 = sphi %s842_s15, %s966_s15   ;;  %s810_s14 = sphi %s840_s14, %s965_s14  }
  0x13   : > { %s24_s18 = ssub.s32 %s818_s0, %s857_s17  ;;  %s27_s19 = sadd.s32 1, %s814_s15 }
  0x14   : > { %p25_p5 = scmp.eq.s32.totalorder %s24_s18, 0  ;;  %p688_p6 = scmp.ne.s32.totalorder %s24_s18, 0 }
  0x15   : > { %p31_p7 = scmp.eq.s32.totalorder %s818_s0, 1  ;;  %p36_p8 = scmp.ne.s32.totalorder %s814_s15, %s810_s14 }
  0x16   : > { %s866_s20 = scalar_select %p25_p5, %s814_s15, %s27_s19  }
  0x17   : > { %p868_p9 = por %p688_p6, %p31_p7  ;;  %p37_p10 = scmp.eq.s32.totalorder %s687_s16, 1 }
  0x18   : > { %p689_p12 = scmp.ge.s32.totalorder %s818_s0, 2 }
  0x19   : > { %p872_p11 = por %p37_p10, %p36_p8  ;;  %s51_s23 = sand.u32 (!%p689_p12), 1, %s814_s15  }
  0x1a   : > { %46 = sbr.rel (%p689_p12) target bundleno = 145 (0x91), region = 12  ;;  %s879_s24 = sshll.u32 (!%p689_p12), %s818_s0, 3 }
  0x1b   : > { %s883_s25 = sshll.u32 (!%p689_p12), %s51_s23, 3  ;;  %s55_s26 = sld [smem:[#allocation5 + %s879_s24]] (!%p689_p12) }
  0x1c   : > { %s53_s30 = scalar_lea.vmem (!%p689_p12), [#allocation6], %s883_s25 }
  0x21   : > { %s56_s29 = scalar_lea.vmem %s961_s1, %s55_s26 }
  0x22   : > { %v75_v0 = vld [vmem:[%s56_s29] sm:$0x1] }
  0x23   : > { %76 = vst [vmem:[#allocation2] sm:$0x1] %v75_v0 }
  0x24   : > { %102 = vsyncadd [#allocation3], 16  ;;  %s103_s3 = sadd.s32 1, %s879_s24 }
  0x25   : > { %s104_s4 = sld [smem:[#allocation5 + %s103_s3]] }
  0x2b   : > { %s105_s7 = scalar_lea.vmem %s961_s1, %s104_s4 }
  0x2c   : > { %v126_v1 = vld [vmem:[%s105_s7] sm:$0x1] }
  0x2d   : > { %127 = vst [vmem:[#allocation2 + $0x1] sm:$0x1] %v126_v1 }
  0x2e   : > { %153 = vsyncadd [#allocation3 + $0x1], 16  ;;  %s154_s8 = sadd.s32 2, %s879_s24 }
  0x2f   : > { %s155_s9 = sld [smem:[#allocation5 + %s154_s8]] }
  0x35   : > { %s156_s12 = scalar_lea.vmem %s961_s1, %s155_s9 }
  0x36   : > { %v177_v2 = vld [vmem:[%s156_s12] sm:$0x1] }
  0x37   : > { %178 = vst [vmem:[#allocation2 + $0x2] sm:$0x1] %v177_v2 }
  0x38   : > { %204 = vsyncadd [#allocation3 + $0x2], 16  ;;  %s205_s13 = sadd.s32 3, %s879_s24 }
  0x39   : > { %s206_s16 = sld [smem:[#allocation5 + %s205_s13]] }
  0x3f   : > { %s207_s26 = scalar_lea.vmem %s961_s1, %s206_s16 }
  0x40   : > { %v228_v3 = vld [vmem:[%s207_s26] sm:$0x1] }
  0x41   : > { %229 = vst [vmem:[#allocation2 + $0x3] sm:$0x1] %v228_v3 }
  0x42   : > { %255 = vsyncadd [#allocation3 + $0x3], 16  ;;  %s256_s27 = sadd.s32 4, %s879_s24 }
  0x43   : > { %s257_s28 = sld [smem:[#allocation5 + %s256_s27]] }
  0x49   : > { %s258_s4 = scalar_lea.vmem %s961_s1, %s257_s28 }
  0x4a   : > { %v279_v4 = vld [vmem:[%s258_s4] sm:$0x1] }
  0x4b   : > { %280 = vst [vmem:[#allocation2 + $0x4] sm:$0x1] %v279_v4 }
  0x4c   : > { %306 = vsyncadd [#allocation3 + $0x4], 16  ;;  %s307_s5 = sadd.s32 5, %s879_s24 }
  0x4d   : > { %s308_s6 = sld [smem:[#allocation5 + %s307_s5]] }
  0x53   : > { %s309_s9 = scalar_lea.vmem %s961_s1, %s308_s6 }
  0x54   : > { %v330_v5 = vld [vmem:[%s309_s9] sm:$0x1] }
  0x55   : > { %331 = vst [vmem:[#allocation2 + $0x5] sm:$0x1] %v330_v5 }
  0x56   : > { %357 = vsyncadd [#allocation3 + $0x5], 16  ;;  %s358_s10 = sadd.s32 6, %s879_s24 }
  0x57   : > { %s359_s11 = sld [smem:[#allocation5 + %s358_s10]] }
  0x5d   : > { %s360_s16 = scalar_lea.vmem %s961_s1, %s359_s11 }
  0x5e   : > { %v381_v6 = vld [vmem:[%s360_s16] sm:$0x1] }
  0x5f   : > { %382 = vst [vmem:[#allocation2 + $0x6] sm:$0x1] %v381_v6 }
  0x60   : > { %408 = vsyncadd [#allocation3 + $0x6], 16  ;;  %s409_s18 = sadd.s32 7, %s879_s24 }
  0x61   : > { %s410_s19 = sld [smem:[#allocation5 + %s409_s18]] }
  0x67   : > { %s411_s28 = scalar_lea.vmem %s961_s1, %s410_s19 }
  0x68   : > { %v432_v7 = vld [vmem:[%s411_s28] sm:$0x1] }
  0x69   : > { %433 = vst [vmem:[#allocation2 + $0x7] sm:$0x1] %v432_v7 }
  0x6a   : > { %459 = vsyncadd [#allocation3 + $0x7], 16 }
  0x6b   : > { %788 = dma.done.wait [#allocation3], 16 }
  0x6c   : > { %789 = vsyncadd [#allocation3], 4294967280 }
  0x6d   : > { %790 = dma.done.wait [#allocation3 + $0x1], 16 }
  0x6e   : > { %791 = vsyncadd [#allocation3 + $0x1], 4294967280 }
  0x6f   : > { %792 = dma.done.wait [#allocation3 + $0x2], 16 }
  0x70   : > { %793 = vsyncadd [#allocation3 + $0x2], 4294967280 }
  0x71   : > { %794 = dma.done.wait [#allocation3 + $0x3], 16 }
  0x72   : > { %795 = vsyncadd [#allocation3 + $0x3], 4294967280 }
  0x73   : > { %796 = dma.done.wait [#allocation3 + $0x4], 16 }
  0x74   : > { %797 = vsyncadd [#allocation3 + $0x4], 4294967280 }
  0x75   : > { %798 = dma.done.wait [#allocation3 + $0x5], 16 }
  0x76   : > { %799 = vsyncadd [#allocation3 + $0x5], 4294967280 }
  0x77   : > { %800 = dma.done.wait [#allocation3 + $0x6], 16 }
  0x78   : > { %801 = vsyncadd [#allocation3 + $0x6], 4294967280 }
  0x79   : > { %802 = dma.done.wait [#allocation3 + $0x7], 16 }
  0x7a   : > { %803 = vsyncadd [#allocation3 + $0x7], 4294967280  ;;  %s693_s24 = sshll.u32 %s818_s0, 7  ;;  %s494_s29 = sshll.u32 %s53_s30, 4  ;;  %vm478_vm0 = vcmask 261120   ;;  %v477_v8 = vld [vmem:[#allocation2] sm:$0xff]  ;;  %s495_s29 = int_to_ptr.vmem [resolvable:$true] %s494_s29 }
  0x7b   : > { %s924_s5 = scalar_lea.hbm %s962_s2, %s693_s24  ;;  %479 = vst.msk [vmem:[%s53_s30] sm:$0xff] %vm478_vm0, %v477_v8  ;;  %s481_s6 = scalar_lea.sflag [#allocation7], %s51_s23 }
  0x7c   : > { %s748_s7 = scalar_lea.vmem %s495_s29, 128  ;;  %s821_s8 = smov [#allocation6]  }
  0x7d   : > { %p749_p13 = scmp.ne.s32.totalorder %s495_s29, %s748_s7  ;;  %s752_s9 = sshll.u32 %s821_s8, 4  ;;  %s753_s9 = int_to_ptr.vmem [resolvable:$false] %s752_s9 }
  0x7e   : > { %s754_s10 = scalar_lea.vmem %s753_s9, 256  ;;  %p755_p2 = scmp.lt.s32.totalorder %s495_s29, %s753_s9 }
  0x7f   : > { %p750_p0 = pnand %p749_p13, %p868_p9  ;;  %p756_p3 = scmp.lt.s32.totalorder %s754_s10, %s748_s7 }
  0x81   : > { %p751_p1 = pneg %p750_p0  ;;  %p757_p4 = por %p756_p3, %p755_p2 }
  0x83   : > { %p758_p5 = pnand %p757_p4, %p751_p1 }
  0x85   : > { %761 = shalt.err (!%p758_p5)
}
  0x86   : > { %s762_s25 = scalar_lea.hbm %s924_s5, 128  ;;  %s766_s11 = scalar_lea.hbm %s962_s2, 256 }
  0x87   : > { %p763_p6 = scmp.ne.s32.totalorder %s924_s5, %s762_s25  ;;  %p767_p10 = scmp.lt.s32.totalorder %s924_s5, %s962_s2 }
  0x88   : > { %p768_p12 = scmp.lt.s32.totalorder %s766_s11, %s762_s25 }
  0x89   : > { %p764_p7 = pnand %p763_p6, %p868_p9 }
  0x8a   : > { %p769_p13 = por %p768_p12, %p767_p10 }
  0x8b   : > { %p765_p8 = pneg %p764_p7 }
  0x8d   : > { %p770_p0 = pnand %p769_p13, %p765_p8 }
  0x8f   : > { %773 = shalt.err (!%p770_p0)
}
  0x90   : > { %704 = dma.vmem_to_hbm [thread:$0]  (%p868_p9), %s495_s29, 128, %s924_s5, %s481_s6  }
  0x91 PF: > { %p710_p1 = scmp.ge.s32.totalorder %s818_s0, 1  ;;  %s506_s16 = sand.u32 1, %s810_s14  }
  0x92   : > { %s507_s18 = scalar_lea.sflag [#allocation7], %s506_s16 }
  0x93   : > { %p707_p2 = pnand %p710_p1, %p872_p11 }
  0x95   : > { %p708_p3 = pneg %p707_p2 }
  0x97   : > { %805 = dma.done.wait (%p708_p3), %s507_s18, 128  }
  0x98   : > { %807 = vsyncadd (%p708_p3), %s507_s18, 4294967168  ;;  %p18_p4 = scmp.ge.s32.totalorder %s857_s17, 3   ;;  %s965_s14 = smov %s814_s15 }
  0x99   : > { %s966_s15 = smov %s866_s20  ;;  %s967_s0 = smov %s857_s17 }
  0x9a   :  { %20 = sbr.rel (!%p18_p4) target bundleno = 18 (0x12), region = 393 }
  0x9f   :  { %512 = vsyncpa [#allocation7], 1 }
  0xa0   :  { %514 = vsyncpa [#allocation7 + $0x1], 1 }
  0xa1   :  { %515 = vsyncmov [#allocation3] }
  0xa4   :  { %s516_s0 = vpop.sfrf %515 }
  0xa5   :  { %p696_p9 = scmp.ne.s32.totalorder %s516_s0, 0 }
  0xa7   :  { %520 = shalt.err (%p696_p9)  }
  0xa8   :  { %522 = vsyncmov [#allocation3 + $0x1] }
  0xab   :  { %s523_s21 = vpop.sfrf %522 }
  0xac   :  { %p697_p11 = scmp.ne.s32.totalorder %s523_s21, 0 }
  0xae   :  { %527 = shalt.err (%p697_p11)  }
  0xaf   :  { %529 = vsyncmov [#allocation3 + $0x2] }
  0xb2   :  { %s530_s22 = vpop.sfrf %529 }
  0xb3   :  { %p698_p5 = scmp.ne.s32.totalorder %s530_s22, 0 }
  0xb5   :  { %534 = shalt.err (%p698_p5)  }
  0xb6   :  { %536 = vsyncmov [#allocation3 + $0x3] }
  0xb9   :  { %s537_s19 = vpop.sfrf %536 }
  0xba   :  { %p699_p6 = scmp.ne.s32.totalorder %s537_s19, 0 }
  0xbc   :  { %541 = shalt.err (%p699_p6)  }
  0xbd   :  { %543 = vsyncmov [#allocation3 + $0x4] }
  0xc0   :  { %s544_s17 = vpop.sfrf %543 }
  0xc1   :  { %p700_p7 = scmp.ne.s32.totalorder %s544_s17, 0 }
  0xc3   :  { %548 = shalt.err (%p700_p7)  }
  0xc4   :  { %550 = vsyncmov [#allocation3 + $0x5] }
  0xc7   :  { %s551_s1 = vpop.sfrf %550 }
  0xc8   :  { %p701_p8 = scmp.ne.s32.totalorder %s551_s1, 0 }
  0xca   :  { %555 = shalt.err (%p701_p8)  }
  0xcb   :  { %557 = vsyncmov [#allocation3 + $0x6] }
  0xce   :  { %s558_s2 = vpop.sfrf %557 }
  0xcf   :  { %p702_p10 = scmp.ne.s32.totalorder %s558_s2, 0 }
  0xd1   :  { %562 = shalt.err (%p702_p10)  }
  0xd2   :  { %564 = vsyncmov [#allocation3 + $0x7] }
  0xd5   :  { %s565_s14 = vpop.sfrf %564 }
  0xd6   :  { %p703_p12 = scmp.ne.s32.totalorder %s565_s14, 0 }
  0xd8   :  { %569 = shalt.err (%p703_p12)  }

</bundles_post_ra>
